<compile_context>
chip_gen: v7x
topology: tpu7x:2x2x1
jax: 0.10.0
libtpu: 0.0.40
codegen_flags: <defaults>
</compile_context>

<pallas_src>
import functools

import jax
import jax.numpy as jnp
from jax.experimental import pallas as pl
from jax.experimental.pallas import tpu as pltpu


def _vanilla_kto_kernel(pc_ref, rc_ref, pr_ref, rr_ref,
                        loss_ref, cr_ref, rjr_ref,
                        *, beta, n_chosen, n_rejected):
    pc = pc_ref[...]          # (1, Bpad) f32  policy chosen logps
    rc = rc_ref[...]          # (1, Bpad) f32  reference chosen logps
    pr = pr_ref[...]          # (1, Bpad) f32  policy rejected logps
    rr = rr_ref[...]          # (1, Bpad) f32  reference rejected logps

    bpad = pc.shape[-1]
    lane = jax.lax.broadcasted_iota(jnp.int32, (1, bpad), 1)
    c_mask = (lane < n_chosen).astype(jnp.float32)
    r_mask = (lane < n_rejected).astype(jnp.float32)

    chosen_logratios = pc - rc
    rejected_logratios = pr - rr

    # KL estimates: mean over valid lanes, clamped at 0.
    chosen_kl = jnp.maximum(
        jnp.sum(chosen_logratios * c_mask) / float(n_chosen), 0.0)
    rejected_kl = jnp.maximum(
        jnp.sum(rejected_logratios * r_mask) / float(n_rejected), 0.0)

    # 1 - sigmoid(z) == 1 / (1 + exp(z))
    chosen_losses = 1.0 / (1.0 + jnp.exp(beta * (chosen_logratios - rejected_kl)))
    rejected_losses = 1.0 / (1.0 + jnp.exp(beta * (chosen_kl - rejected_logratios)))

    total = jnp.sum(chosen_losses * c_mask) + jnp.sum(rejected_losses * r_mask)
    loss_ref[...] = (total / float(n_chosen + n_rejected)).reshape(1, 1)

    # Rewards (padded lanes hold garbage and are sliced off in the wrapper).
    cr_ref[...] = beta * chosen_logratios
    rjr_ref[...] = beta * rejected_logratios


def vanilla_kto_loss_pallas(policy_chosen_logps, policy_rejected_logps,
                            reference_chosen_logps, reference_rejected_logps,
                            *, beta):
    n_chosen = policy_chosen_logps.shape[0]
    n_rejected = policy_rejected_logps.shape[0]
    bpad = max(128, pl.cdiv(max(n_chosen, n_rejected), 128) * 128)

    def prep(x):
        n = x.shape[0]
        x2 = x.astype(jnp.float32).reshape(1, n)
        return jnp.pad(x2, ((0, 0), (0, bpad - n)))

    pc = prep(policy_chosen_logps)
    rc = prep(reference_chosen_logps)
    pr = prep(policy_rejected_logps)
    rr = prep(reference_rejected_logps)

    kernel = functools.partial(
        _vanilla_kto_kernel,
        beta=float(beta), n_chosen=n_chosen, n_rejected=n_rejected)

    vec_spec = pl.BlockSpec((1, bpad), lambda i: (0, 0))
    loss, chosen_rewards, rejected_rewards = pl.pallas_call(
        kernel,
        out_shape=(jax.ShapeDtypeStruct((1, 1), jnp.float32),
                   jax.ShapeDtypeStruct((1, bpad), jnp.float32),
                   jax.ShapeDtypeStruct((1, bpad), jnp.float32)),
        grid=(1,),
        in_specs=[vec_spec, vec_spec, vec_spec, vec_spec],
        out_specs=(pl.BlockSpec((1, 1), lambda i: (0, 0)),
                   vec_spec, vec_spec),
        compiler_params=pltpu.CompilerParams(
            dimension_semantics=("arbitrary",)),
    )(pc, rc, pr, rr)

    return (loss[0, 0],
            chosen_rewards[0, :n_chosen],
            rejected_rewards[0, :n_rejected])


def vanilla_kto_loss_ref(policy_chosen_logps, policy_rejected_logps,
                         reference_chosen_logps, reference_rejected_logps,
                         *, beta):
    """Pure-JAX reference mirroring the PyTorch VanillaKTOLoss.forward."""
    chosen_kl = jnp.maximum(
        jnp.mean(policy_chosen_logps - reference_chosen_logps), 0.0)
    rejected_kl = jnp.maximum(
        jnp.mean(policy_rejected_logps - reference_rejected_logps), 0.0)
    chosen_logratios = policy_chosen_logps - reference_chosen_logps
    rejected_logratios = policy_rejected_logps - reference_rejected_logps
    losses = jnp.mean(jnp.concatenate([
        1.0 - jax.nn.sigmoid(beta * (chosen_logratios - rejected_kl)),
        1.0 - jax.nn.sigmoid(beta * (chosen_kl - rejected_logratios))], axis=0))
    chosen_rewards = beta * chosen_logratios
    rejected_rewards = beta * rejected_logratios
    return losses, chosen_rewards, rejected_rewards


if __name__ == "__main__":
    B = 8          # micro-batch of sequences (even sampling: same count each side)
    beta = 0.1

    key = jax.random.PRNGKey(0)
    k1, k2, k3, k4 = jax.random.split(key, 4)

    # Sequence log-probs are negative; make them realistic-ish.
    policy_chosen_logps = -jnp.abs(jax.random.normal(k1, (B,), jnp.float32)) * 5.0
    policy_rejected_logps = -jnp.abs(jax.random.normal(k2, (B,), jnp.float32)) * 5.0
    reference_chosen_logps = -jnp.abs(jax.random.normal(k3, (B,), jnp.float32)) * 5.0
    reference_rejected_logps = -jnp.abs(jax.random.normal(k4, (B,), jnp.float32)) * 5.0

    loss, cr, rjr = vanilla_kto_loss_pallas(
        policy_chosen_logps, policy_rejected_logps,
        reference_chosen_logps, reference_rejected_logps, beta=beta)
    loss = jax.block_until_ready(loss)
    cr = jax.block_until_ready(cr)
    rjr = jax.block_until_ready(rjr)

    loss_ref, cr_ref, rjr_ref = vanilla_kto_loss_ref(
        policy_chosen_logps, policy_rejected_logps,
        reference_chosen_logps, reference_rejected_logps, beta=beta)

    assert jnp.allclose(loss, loss_ref, rtol=1e-5, atol=1e-5), (loss, loss_ref)
    assert jnp.allclose(cr, cr_ref, rtol=1e-5, atol=1e-5)
    assert jnp.allclose(rjr, rjr_ref, rtol=1e-5, atol=1e-5)

    print("KERNEL_OK")
</pallas_src>

<mosaic_0001>
module attributes {stable_mosaic.version = 11 : i64} {
  func.func @_vanilla_kto_kernel(%arg0: i32, %arg1: memref<1x128xf32, #tpu.memory_space<vmem>>, %arg2: memref<1x128xf32, #tpu.memory_space<vmem>>, %arg3: memref<1x128xf32, #tpu.memory_space<vmem>>, %arg4: memref<1x128xf32, #tpu.memory_space<vmem>>, %arg5: memref<1x1xf32, #tpu.memory_space<vmem>>, %arg6: memref<1x128xf32, #tpu.memory_space<vmem>>, %arg7: memref<1x128xf32, #tpu.memory_space<vmem>>) attributes {dimension_semantics = [#tpu.dimension_semantics<arbitrary>], iteration_bounds = array<i64: 1>, scalar_prefetch = 0 : i64, scratch_operands = 0 : i64, tpu.core_type = #tpu.core_type<tc>, window_params = [{pipeline_mode = #tpu.pipeline_mode<synchronous>, transform_indices = @transform_0, window_bounds = array<i64: 1, 128>}, {pipeline_mode = #tpu.pipeline_mode<synchronous>, transform_indices = @transform_1, window_bounds = array<i64: 1, 128>}, {pipeline_mode = #tpu.pipeline_mode<synchronous>, transform_indices = @transform_2, window_bounds = array<i64: 1, 128>}, {pipeline_mode = #tpu.pipeline_mode<synchronous>, transform_indices = @transform_3, window_bounds = array<i64: 1, 128>}, {pipeline_mode = #tpu.pipeline_mode<synchronous>, transform_indices = @transform_4, window_bounds = array<i64: 1, 1>}, {pipeline_mode = #tpu.pipeline_mode<synchronous>, transform_indices = @transform_5, window_bounds = array<i64: 1, 128>}, {pipeline_mode = #tpu.pipeline_mode<synchronous>, transform_indices = @transform_6, window_bounds = array<i64: 1, 128>}]} {
    %c0 = arith.constant 0 : index
    %c0_0 = arith.constant 0 : index
    %0 = vector.load %arg1[%c0, %c0_0] : memref<1x128xf32, #tpu.memory_space<vmem>>, vector<1x128xf32>
    %c0_1 = arith.constant 0 : index
    %c0_2 = arith.constant 0 : index
    %1 = vector.load %arg2[%c0_1, %c0_2] : memref<1x128xf32, #tpu.memory_space<vmem>>, vector<1x128xf32>
    %c0_3 = arith.constant 0 : index
    %c0_4 = arith.constant 0 : index
    %2 = vector.load %arg3[%c0_3, %c0_4] : memref<1x128xf32, #tpu.memory_space<vmem>>, vector<1x128xf32>
    %c0_5 = arith.constant 0 : index
    %c0_6 = arith.constant 0 : index
    %3 = vector.load %arg4[%c0_5, %c0_6] : memref<1x128xf32, #tpu.memory_space<vmem>>, vector<1x128xf32>
    %4 = tpu.iota {dimensions = array<i32: 1>} : vector<1x128xi32>
    %c8_i32 = arith.constant 8 : i32
    %5 = vector.broadcast %c8_i32 : i32 to vector<1x128xi32>
    %6 = arith.cmpi slt, %4, %5 : vector<1x128xi32>
    %7 = arith.extui %6 : vector<1x128xi1> to vector<1x128xi32>
    %8 = arith.sitofp %7 : vector<1x128xi32> to vector<1x128xf32>
    %c8_i32_7 = arith.constant 8 : i32
    %9 = vector.broadcast %c8_i32_7 : i32 to vector<1x128xi32>
    %10 = arith.cmpi slt, %4, %9 : vector<1x128xi32>
    %11 = arith.extui %10 : vector<1x128xi1> to vector<1x128xi32>
    %12 = arith.sitofp %11 : vector<1x128xi32> to vector<1x128xf32>
    %13 = arith.subf %0, %1 : vector<1x128xf32>
    %14 = arith.subf %2, %3 : vector<1x128xf32>
    %15 = arith.mulf %13, %8 : vector<1x128xf32>
    %16 = vector.shape_cast %15 : vector<1x128xf32> to vector<1x1x128xf32>
    %cst = arith.constant dense<0.000000e+00> : vector<1xf32>
    %17 = vector.multi_reduction <add>, %16, %cst [1, 2] : vector<1x1x128xf32> to vector<1xf32>
    %18 = vector.shape_cast %17 : vector<1xf32> to vector<1x1x1xf32>
    %19 = vector.extract %18[0, 0, 0] : f32 from vector<1x1x1xf32>
    %cst_8 = arith.constant 8.000000e+00 : f32
    %20 = arith.divf %19, %cst_8 : f32
    %cst_9 = arith.constant 0.000000e+00 : f32
    %21 = arith.maximumf %20, %cst_9 : f32
    %22 = arith.mulf %14, %12 : vector<1x128xf32>
    %23 = vector.shape_cast %22 : vector<1x128xf32> to vector<1x1x128xf32>
    %cst_10 = arith.constant dense<0.000000e+00> : vector<1xf32>
    %24 = vector.multi_reduction <add>, %23, %cst_10 [1, 2] : vector<1x1x128xf32> to vector<1xf32>
    %25 = vector.shape_cast %24 : vector<1xf32> to vector<1x1x1xf32>
    %26 = vector.extract %25[0, 0, 0] : f32 from vector<1x1x1xf32>
    %cst_11 = arith.constant 8.000000e+00 : f32
    %27 = arith.divf %26, %cst_11 : f32
    %cst_12 = arith.constant 0.000000e+00 : f32
    %28 = arith.maximumf %27, %cst_12 : f32
    %29 = vector.broadcast %28 : f32 to vector<1x128xf32>
    %30 = arith.subf %13, %29 : vector<1x128xf32>
    %cst_13 = arith.constant 1.000000e-01 : f32
    %31 = vector.broadcast %cst_13 : f32 to vector<1x128xf32>
    %32 = arith.mulf %31, %30 : vector<1x128xf32>
    %33 = math.exp %32 : vector<1x128xf32>
    %cst_14 = arith.constant 1.000000e+00 : f32
    %34 = vector.broadcast %cst_14 : f32 to vector<1x128xf32>
    %35 = arith.addf %34, %33 : vector<1x128xf32>
    %cst_15 = arith.constant 1.000000e+00 : f32
    %36 = vector.broadcast %cst_15 : f32 to vector<1x128xf32>
    %37 = arith.divf %36, %35 : vector<1x128xf32>
    %38 = vector.broadcast %21 : f32 to vector<1x128xf32>
    %39 = arith.subf %38, %14 : vector<1x128xf32>
    %cst_16 = arith.constant 1.000000e-01 : f32
    %40 = vector.broadcast %cst_16 : f32 to vector<1x128xf32>
    %41 = arith.mulf %40, %39 : vector<1x128xf32>
    %42 = math.exp %41 : vector<1x128xf32>
    %cst_17 = arith.constant 1.000000e+00 : f32
    %43 = vector.broadcast %cst_17 : f32 to vector<1x128xf32>
    %44 = arith.addf %43, %42 : vector<1x128xf32>
    %cst_18 = arith.constant 1.000000e+00 : f32
    %45 = vector.broadcast %cst_18 : f32 to vector<1x128xf32>
    %46 = arith.divf %45, %44 : vector<1x128xf32>
    %47 = arith.mulf %37, %8 : vector<1x128xf32>
    %48 = vector.shape_cast %47 : vector<1x128xf32> to vector<1x1x128xf32>
    %cst_19 = arith.constant dense<0.000000e+00> : vector<1xf32>
    %49 = vector.multi_reduction <add>, %48, %cst_19 [1, 2] : vector<1x1x128xf32> to vector<1xf32>
    %50 = vector.shape_cast %49 : vector<1xf32> to vector<1x1x1xf32>
    %51 = vector.extract %50[0, 0, 0] : f32 from vector<1x1x1xf32>
    %52 = arith.mulf %46, %12 : vector<1x128xf32>
    %53 = vector.shape_cast %52 : vector<1x128xf32> to vector<1x1x128xf32>
    %cst_20 = arith.constant dense<0.000000e+00> : vector<1xf32>
    %54 = vector.multi_reduction <add>, %53, %cst_20 [1, 2] : vector<1x1x128xf32> to vector<1xf32>
    %55 = vector.shape_cast %54 : vector<1xf32> to vector<1x1x1xf32>
    %56 = vector.extract %55[0, 0, 0] : f32 from vector<1x1x1xf32>
    %57 = arith.addf %51, %56 : f32
    %cst_21 = arith.constant 1.600000e+01 : f32
    %58 = arith.divf %57, %cst_21 : f32
    %59 = vector.broadcast %58 : f32 to vector<1x1xf32>
    %c0_22 = arith.constant 0 : index
    %c0_23 = arith.constant 0 : index
    %60 = vector.load %arg5[%c0_22, %c0_23] : memref<1x1xf32, #tpu.memory_space<vmem>>, vector<1x1xf32>
    tpu.vector_store %arg5[%c0_22, %c0_23], %59 {strides = array<i32>} : memref<1x1xf32, #tpu.memory_space<vmem>>, vector<1x1xf32>,
    %cst_24 = arith.constant 1.000000e-01 : f32
    %61 = vector.broadcast %cst_24 : f32 to vector<1x128xf32>
    %62 = arith.mulf %61, %13 : vector<1x128xf32>
    %c0_25 = arith.constant 0 : index
    %c0_26 = arith.constant 0 : index
    %63 = vector.load %arg6[%c0_25, %c0_26] : memref<1x128xf32, #tpu.memory_space<vmem>>, vector<1x128xf32>
    tpu.vector_store %arg6[%c0_25, %c0_26], %62 {strides = array<i32>} : memref<1x128xf32, #tpu.memory_space<vmem>>, vector<1x128xf32>,
    %cst_27 = arith.constant 1.000000e-01 : f32
    %64 = vector.broadcast %cst_27 : f32 to vector<1x128xf32>
    %65 = arith.mulf %64, %14 : vector<1x128xf32>
    %c0_28 = arith.constant 0 : index
    %c0_29 = arith.constant 0 : index
    %66 = vector.load %arg7[%c0_28, %c0_29] : memref<1x128xf32, #tpu.memory_space<vmem>>, vector<1x128xf32>
    tpu.vector_store %arg7[%c0_28, %c0_29], %65 {strides = array<i32>} : memref<1x128xf32, #tpu.memory_space<vmem>>, vector<1x128xf32>,
    return
  }
  func.func @transform_0(%arg0: i32) -> (i32, i32) {
    %c0_i32 = arith.constant 0 : i32
    %c0_i32_0 = arith.constant 0 : i32
    %c0_i32_1 = arith.constant 0 : i32
    return %c0_i32, %c0_i32_0 : i32, i32
  }
  func.func @transform_1(%arg0: i32) -> (i32, i32) {
    %c0_i32 = arith.constant 0 : i32
    %c0_i32_0 = arith.constant 0 : i32
    %c0_i32_1 = arith.constant 0 : i32
    return %c0_i32, %c0_i32_0 : i32, i32
  }
  func.func @transform_2(%arg0: i32) -> (i32, i32) {
    %c0_i32 = arith.constant 0 : i32
    %c0_i32_0 = arith.constant 0 : i32
    %c0_i32_1 = arith.constant 0 : i32
    return %c0_i32, %c0_i32_0 : i32, i32
  }
  func.func @transform_3(%arg0: i32) -> (i32, i32) {
    %c0_i32 = arith.constant 0 : i32
    %c0_i32_0 = arith.constant 0 : i32
    %c0_i32_1 = arith.constant 0 : i32
    return %c0_i32, %c0_i32_0 : i32, i32
  }
  func.func @transform_4(%arg0: i32) -> (i32, i32) {
    %c0_i32 = arith.constant 0 : i32
    %c0_i32_0 = arith.constant 0 : i32
    %c0_i32_1 = arith.constant 0 : i32
    return %c0_i32, %c0_i32_0 : i32, i32
  }
  func.func @transform_5(%arg0: i32) -> (i32, i32) {
    %c0_i32 = arith.constant 0 : i32
    %c0_i32_0 = arith.constant 0 : i32
    %c0_i32_1 = arith.constant 0 : i32
    return %c0_i32, %c0_i32_0 : i32, i32
  }
  func.func @transform_6(%arg0: i32) -> (i32, i32) {
    %c0_i32 = arith.constant 0 : i32
    %c0_i32_0 = arith.constant 0 : i32
    %c0_i32_1 = arith.constant 0 : i32
    return %c0_i32, %c0_i32_0 : i32, i32
  }
}

</mosaic_0001>

<bundles_post_ra>
// kernel: tpu_custom_call.1
= control target key start
LH: loop header
LB: loop body
LE: loop exit
PB: predicated region body
PF: predicated region fallthrough
CT: control target
= control target key end

     0   :  { %12 = vsyncpa [#allocation3], 0  ;;  %s386_s0 = inlined_call_operand.hbm [shape: f32[1,128], index: 0, kind: input, shape index: {}]   ;;  %s387_s1 = inlined_call_operand.vmem [shape: f32[1,128], index: 1, kind: input, shape index: {}]   ;;  %s388_s2 = inlined_call_operand.vmem [shape: f32[1,128], index: 2, kind: input, shape index: {}]   ;;  %s389_s3 = inlined_call_operand.vmem [shape: f32[1,128], index: 3, kind: input, shape index: {}]   ;;  %s390_s4 = inlined_call_operand.hbm [shape: f32[1,1], index: 4, kind: output, shape index: {0}]   ;;  %s391_s5 = inlined_call_operand.hbm [shape: f32[1,128], index: 5, kind: output, shape index: {1}]   ;;  %s392_s6 = inlined_call_operand.hbm [shape: f32[1,128], index: 6, kind: output, shape index: {2}]  }
   0x1   :  { %13 = vsyncpa [#allocation4], 0 }
   0x2   :  { %14 = vsyncpa [#allocation7], 0  ;;  %s284_s21 = smov [#allocation2]   ;;  %s190_s25 = scalar_lea.hbm %s386_s0, 16 }
   0x3   :  { %s21_s22 = sshll.u32 %s284_s21, 4  ;;  %p191_p0 = scmp.ne.s32.totalorder %s386_s0, %s190_s25  ;;  %s22_s22 = int_to_ptr.vmem [resolvable:$true] %s21_s22 }
   0x4   :  { %p194_p1 = scmp.lt.u32.totalorder %s190_s25, %s386_s0 }
   0x6   :  { %p196_p2 = pnand %p194_p1, %p191_p0 }
   0x8   :  { %199 = shalt.err (!%p196_p2)
}
   0x9   :  { %s200_s30 = scalar_lea.vmem %s22_s22, 16  ;;  %s204_s7 = scalar_lea.vmem %s22_s22, 32 }
   0xa   :  { %p201_p3 = scmp.ne.s32.totalorder %s22_s22, %s200_s30  ;;  %p205_p4 = scmp.lt.s32.totalorder %s22_s22, %s22_s22 }
   0xb   :  { %p206_p5 = scmp.lt.s32.totalorder %s204_s7, %s200_s30 }
   0xd   :  { %p207_p6 = por %p206_p5, %p205_p4 }
   0xf   :  { %p208_p7 = pnand %p207_p6, %p201_p3 }
  0x11   :  { %211 = shalt.err (!%p208_p7)
}
  0x12   :  { %24 = dma.hbm_to_vmem [thread:$0]  %s386_s0, 16, %s22_s22, [#allocation3]  }
  0x13   :  { %278 = dma.done.wait [#allocation3], 16  }
  0x14   :  { %279 = vsyncadd [#allocation3], 4294967280  ;;  %v38_v0 = vlaneseq  ;;  %v285_v2 = vmov 0.0   ;;  %v34_v4 = vld [vmem:[#allocation2] sm:$0x1]  ;;  %vm46_vm1 = vcmask 1040384  }
  0x15   :  { %v35_v5 = vld [vmem:[%s387_s1] sm:$0x1]  ;;  %s287_s19 = smov [#allocation6]  }
  0x16   :  { %v39_v1 = vand.u32 127, %v38_v0  ;;  %v36_v6 = vld [vmem:[%s388_s2] sm:$0x1]  ;;  %v43_v7 = vsub.f32 %v34_v4, %v35_v5  ;;  %s286_s2 = smov 0.0   ;;  %s141_s20 = sshll.u32 %s287_s19, 4  ;;  %s142_s20 = int_to_ptr.vmem [resolvable:$true] %s141_s20 }
  0x17   :  { %v37_v8 = vld [vmem:[%s389_s3] sm:$0x1]  ;;  %s212_s21 = scalar_lea.vmem %s142_s20, 16  ;;  %s216_s22 = scalar_lea.vmem %s142_s20, 32 }
  0x18   :  { %vm40_vm0 = vcmp.lt.s32.totalorder %v39_v1, 8  ;;  %v44_v9 = vsub.f32 %v36_v6, %v37_v8  ;;  %v121_v46 = vmul.f32 0.1, %v43_v7  ;;  %p213_p8 = scmp.ne.s32.totalorder %s142_s20, %s212_s21  ;;  %p217_p9 = scmp.lt.s32.totalorder %s142_s20, %s142_s20 }
  0x19   :  { %v167_v3 = vsel %vm40_vm0, 1.0, %v285_v2  ;;  %p218_p10 = scmp.lt.s32.totalorder %s216_s22, %s212_s21 }
  0x1a   :  { %v45_v10 = vmul.f32 %v167_v3, %v43_v7  ;;  %v61_v11 = vmul.f32 %v167_v3, %v44_v9  ;;  %v123_v47 = vmul.f32 0.1, %v44_v9  ;;  %122 = vst [vmem:[#allocation6] sm:$0x1] %v121_v46 }
  0x1b   :  { %p219_p11 = por %p218_p10, %p217_p9 }
  0x1c   :  { %v47_v12 = vsel %vm46_vm1, %v45_v10, 0.0  ;;  %v62_v13 = vsel %vm46_vm1, %v61_v11, 0.0 }
  0x1d   :  { %48 = vadd.xlane.f32.xlu0 %v47_v12  ;;  %p220_p12 = pnand %p219_p11, %p213_p8 }
  0x21   :  { %63 = vadd.xlane.f32.xlu0 %v62_v13 }
  0xaa   :  { %v49_v14 = vpop.xlane.xlu0 %48 }
  0xab   :  { %v50_v15 = vrot.slane %v49_v14, 4 }
  0xad   :  { %v51_v16 = vadd.f32 %v50_v15, %v49_v14 }
  0xae   :  { %v64_v17 = vpop.xlane.xlu0 %63 }
  0xaf   :  { %v52_v18 = vrot.slane %v51_v16, 2  ;;  %v65_v19 = vrot.slane %v64_v17, 4 }
  0xb1   :  { %v66_v20 = vadd.f32 %v65_v19, %v64_v17  ;;  %v53_v21 = vadd.f32 %v52_v18, %v51_v16 }
  0xb3   :  { %v67_v22 = vrot.slane %v66_v20, 2  ;;  %v54_v23 = vrot.slane %v53_v21, 1 }
  0xb5   :  { %v68_v24 = vadd.f32 %v67_v22, %v66_v20  ;;  %v55_v25 = vadd.f32 %v54_v23, %v53_v21 }
  0xb7   :  { %168 = vpush %v55_v25  ;;  %v69_v26 = vrot.slane %v68_v24, 1 }
  0xb9   :  { %v70_v27 = vadd.f32 %v69_v26, %v68_v24 }
  0xbb   :  { %170 = vpush %v70_v27 }
  0xe8   :  { %s169_s0 = spop %168 }
  0xe9   :  { %s59_s1 = smul.f32 0.125, %s169_s0 }
  0xeb   :  { %s60_s3 = smax.f32 %s286_s2, %s59_s1 }
  0xec   :  { %v84_v28 = vstv %s60_s3  ;;  %s171_s16 = spop %170 }
  0xed   :  { %v85_v29 = vsub.f32 %v84_v28, %v44_v9  ;;  %s74_s17 = smul.f32 0.125, %s171_s16 }
  0xef   :  { %v86_v30 = vmul.f32 0.1, %v85_v29  ;;  %s75_s18 = smax.f32 %s286_s2, %s74_s17 }
  0xf0   :  { %v76_v31 = vstv %s75_s18 }
  0xf1   :  { %v87_v32 = vmul.f32 1.442695, %v86_v30  ;;  %v77_v33 = vsub.f32 %v43_v7, %v76_v31 }
  0xf3   :  { %182 = vpow2.f32 %v87_v32  ;;  %v78_v34 = vmul.f32 0.1, %v77_v33 }
  0xf5   :  { %v79_v35 = vmul.f32 1.442695, %v78_v34 }
  0xf7   :  { %184 = vpow2.f32 %v79_v35 }
  0xfd   :  { %v183_v36 = vpop.eup %182 }
  0xfe   :  { %v89_v37 = vadd.f32 1.0, %v183_v36 }
 0x100   :  { %186 = vrcp.f32 %v89_v37 }
 0x101   :  { %v185_v38 = vpop.eup %184 }
 0x102   :  { %v81_v39 = vadd.f32 1.0, %v185_v38 }
 0x104   :  { %188 = vrcp.f32 %v81_v39 }
 0x10a   :  { %v187_v40 = vpop.eup %186 }
 0x10b   :  { %v103_v44 = vmul.f32 %v187_v40, %v167_v3 }
 0x10d   :  { %v104_v45 = vsel %vm46_vm1, %v103_v44, 0.0 }
 0x10e   :  { %v189_v41 = vpop.eup %188 }
 0x10f   :  { %v92_v42 = vmul.f32 %v189_v41, %v167_v3 }
 0x111   :  { %v93_v43 = vsel %vm46_vm1, %v92_v42, 0.0 }
 0x112   :  { %94 = vadd.xlane.f32.xlu1 %v93_v43 }
 0x116   :  { %105 = vadd.xlane.f32.xlu1 %v104_v45 }
 0x117   :  { %223 = shalt.err (!%p220_p12)
}
 0x118   :  { %s224_s25 = scalar_lea.hbm %s391_s5, 16 }
 0x119   :  { %p225_p13 = scmp.ne.s32.totalorder %s391_s5, %s224_s25  ;;  %p228_p0 = scmp.lt.u32.totalorder %s224_s25, %s391_s5 }
 0x11b   :  { %p230_p1 = pnand %p228_p0, %p225_p13 }
 0x11d   :  { %233 = shalt.err (!%p230_p1)
}
 0x11e   :  { %144 = dma.vmem_to_hbm [thread:$0]  %s142_s20, 16, %s391_s5, [#allocation7]   ;;  %124 = vst [vmem:[#allocation8] sm:$0x1] %v123_v47 }
 0x11f   :  { %s288_s8 = smov [#allocation8]  }
 0x120   :  { %s151_s9 = sshll.u32 %s288_s8, 4  ;;  %s152_s9 = int_to_ptr.vmem [resolvable:$true] %s151_s9 }
 0x121   :  { %s234_s10 = scalar_lea.vmem %s152_s9, 16  ;;  %s238_s11 = scalar_lea.vmem %s152_s9, 32 }
 0x122   :  { %p235_p2 = scmp.ne.s32.totalorder %s152_s9, %s234_s10  ;;  %p239_p3 = scmp.lt.s32.totalorder %s152_s9, %s152_s9 }
 0x123   :  { %p240_p4 = scmp.lt.s32.totalorder %s238_s11, %s234_s10 }
 0x125   :  { %p241_p5 = por %p240_p4, %p239_p3 }
 0x127   :  { %p242_p6 = pnand %p241_p5, %p235_p2 }
 0x129   :  { %245 = shalt.err (!%p242_p6)
}
 0x12a   :  { %s246_s14 = scalar_lea.hbm %s392_s6, 16 }
 0x12b   :  { %p247_p7 = scmp.ne.s32.totalorder %s392_s6, %s246_s14  ;;  %p250_p8 = scmp.lt.u32.totalorder %s246_s14, %s392_s6 }
 0x12d   :  { %p252_p9 = pnand %p250_p8, %p247_p7 }
 0x12f   :  { %255 = shalt.err (!%p252_p9)
}
 0x130   :  { %154 = dma.vmem_to_hbm [thread:$0]  %s152_s9, 16, %s392_s6, [#allocation7]   ;;  %vm119_vm2 = vcmask 0  }
 0x131   :  { %s289_s6 = smov [#allocation5]  }
 0x132   :  { %s131_s19 = sshll.u32 %s289_s6, 4  ;;  %s132_s19 = int_to_ptr.vmem [resolvable:$true] %s131_s19 }
 0x133   :  { %s256_s21 = scalar_lea.vmem %s132_s19, 16  ;;  %s260_s22 = scalar_lea.vmem %s132_s19, 32 }
 0x134   :  { %p257_p10 = scmp.ne.s32.totalorder %s132_s19, %s256_s21  ;;  %p261_p11 = scmp.lt.s32.totalorder %s132_s19, %s132_s19 }
 0x135   :  { %p262_p12 = scmp.lt.s32.totalorder %s260_s22, %s256_s21 }
 0x137   :  { %p263_p13 = por %p262_p12, %p261_p11 }
 0x139   :  { %p264_p0 = pnand %p263_p13, %p257_p10 }
 0x19f   :  { %v95_v48 = vpop.xlane.xlu1 %94 }
 0x1a0   :  { %v96_v49 = vrot.slane %v95_v48, 4 }
 0x1a2   :  { %v97_v50 = vadd.f32 %v96_v49, %v95_v48 }
 0x1a3   :  { %v106_v51 = vpop.xlane.xlu1 %105 }
 0x1a4   :  { %v98_v52 = vrot.slane %v97_v50, 2  ;;  %v107_v53 = vrot.slane %v106_v51, 4 }
 0x1a6   :  { %v108_v54 = vadd.f32 %v107_v53, %v106_v51  ;;  %v99_v55 = vadd.f32 %v98_v52, %v97_v50 }
 0x1a8   :  { %v109_v56 = vrot.slane %v108_v54, 2  ;;  %v100_v57 = vrot.slane %v99_v55, 1 }
 0x1aa   :  { %v110_v58 = vadd.f32 %v109_v56, %v108_v54  ;;  %v101_v59 = vadd.f32 %v100_v57, %v99_v55 }
 0x1ac   :  { %172 = vpush %v101_v59  ;;  %v111_v60 = vrot.slane %v110_v58, 1 }
 0x1ae   :  { %v112_v61 = vadd.f32 %v111_v60, %v110_v58 }
 0x1b0   :  { %174 = vpush %v112_v61 }
 0x1dd   :  { %s173_s16 = spop %172 }
 0x1e1   :  { %s175_s17 = spop %174 }
 0x1e2   :  { %s114_s18 = sadd.f32 %s175_s17, %s173_s16 }
 0x1e4   :  { %s117_s20 = smul.f32 0.0625, %s114_s18 }
 0x1e6   :  { %v118_v62 = vstv %s117_s20 }
 0x1e7   :  { %120 = vst.msk [vmem:[#allocation5] sm:$0x1] %vm119_vm2, %v118_v62 }
 0x1e8   :  { %267 = shalt.err (!%p264_p0)
}
 0x1e9   :  { %s268_s25 = scalar_lea.hbm %s390_s4, 16 }
 0x1ea   :  { %p269_p1 = scmp.ne.s32.totalorder %s390_s4, %s268_s25  ;;  %p272_p2 = scmp.lt.u32.totalorder %s268_s25, %s390_s4 }
 0x1ec   :  { %p274_p3 = pnand %p272_p2, %p269_p1 }
 0x1ee   :  { %277 = shalt.err (!%p274_p3)
}
 0x1ef   :  { %134 = dma.vmem_to_hbm [thread:$0]  %s132_s19, 16, %s390_s4, [#allocation4]  }
 0x1f0   :  { %280 = dma.done.wait [#allocation4], 16  }
 0x1f1   :  { %281 = vsyncadd [#allocation4], 4294967280 }
 0x1f2   :  { %282 = dma.done.wait [#allocation7], 32  }
 0x1f3   :  { %283 = vsyncadd [#allocation7], 4294967264 }
 0x1f4   :  { %164 = vsyncpa [#allocation3], 1 }
 0x1f5   :  { %165 = vsyncpa [#allocation4], 1 }
 0x1f6   :  { %166 = vsyncpa [#allocation7], 1 }

</bundles_post_ra>
